<compile_context>
chip_gen: v5e
topology: v5e:2x2
jax: 0.10.0
libtpu: 0.0.40
codegen_flags: <defaults>
</compile_context>

<pallas_src>
import jax
import jax.numpy as jnp
from jax.experimental import pallas as pl
from jax.experimental.pallas import tpu as pltpu

IN_DIM = 784
HIDDEN = 100
OUT = 10
HIDDEN_PAD = 128
OUT_PAD = 128
TILE_B_MAX = 2048  # f32 x tile: 2048*784*4B = 6.4 MB x2 bufs + out/weights ~ 15 MB total


def _round_up(n, m):
    return ((n + m - 1) // m) * m


def mnist_fc_kernel(x_ref, w1t_ref, w2t_ref, o_ref):
    # x_ref:   (tile_b, 784)   f32  (native dtype; cast to bf16 here, feeding the MXU)
    # w1t_ref: (784, 128)      bf16 (fclayer1.weight^T, zero-padded 100->128)
    # w2t_ref: (128, 128)      bf16 (fclayer2.weight^T, zero-padded rows/cols)
    # o_ref:   (tile_b, 128)   bf16 (cols 10..127 are padding, sliced off by wrapper)
    x = x_ref[...].astype(w1t_ref.dtype)
    h = jnp.dot(x, w1t_ref[...], preferred_element_type=jnp.float32)
    # modified_sigmoid: 1/(1 + exp(-2h)) == 0.5*(tanh(h) + 1)  -- f32, EUP
    h = 0.5 * (jnp.tanh(h) + 1.0)
    # Tiny 128x128 second matmul: keep LHS in f32 (no second quantization step).
    out = jnp.dot(h, w2t_ref[...].astype(jnp.float32),
                  preferred_element_type=jnp.float32)
    o_ref[...] = out.astype(o_ref.dtype)


def prepare_weights(w1, w2, dtype=jnp.bfloat16):
    """Hoisted out of the forward path: transpose, zero-pad to lane multiples, cast."""
    w1t = jnp.zeros((IN_DIM, HIDDEN_PAD), dtype).at[:, :HIDDEN].set(
        jnp.transpose(w1).astype(dtype))
    w2t = jnp.zeros((HIDDEN_PAD, OUT_PAD), dtype).at[:HIDDEN, :OUT].set(
        jnp.transpose(w2).astype(dtype))
    return w1t, w2t


@jax.jit
def mnist_fc_forward(x_nchw, w1t_pad, w2t_pad):
    """x_nchw: (B, 1, 28, 28) f32; w1t_pad: (784, 128) bf16; w2t_pad: (128, 128) bf16.
    Returns (B, 10) float32."""
    B = x_nchw.shape[0]
    x2d = x_nchw.reshape(B, IN_DIM)  # x.view(-1, 784); stays in native dtype

    # >= 2 tiles whenever B permits (v7x dual-TC sharding); tile_b a multiple of 8
    # sublanes; ragged final block handled by Pallas -- no explicit batch padding.
    n_tiles = max(2, pl.cdiv(B, TILE_B_MAX))
    tile_b = min(TILE_B_MAX, _round_up(pl.cdiv(B, n_tiles), 8))
    grid = (pl.cdiv(B, tile_b),)

    out = pl.pallas_call(
        mnist_fc_kernel,
        out_shape=jax.ShapeDtypeStruct((B, OUT_PAD), jnp.bfloat16),
        grid=grid,
        in_specs=[
            pl.BlockSpec((tile_b, IN_DIM), lambda i: (i, 0)),        # x: tiled over batch
            pl.BlockSpec((IN_DIM, HIDDEN_PAD), lambda i: (0, 0)),    # W1^T: VMEM-resident
            pl.BlockSpec((HIDDEN_PAD, OUT_PAD), lambda i: (0, 0)),   # W2^T: VMEM-resident
        ],
        out_specs=pl.BlockSpec((tile_b, OUT_PAD), lambda i: (i, 0)),
        compiler_params=pltpu.CompilerParams(
            dimension_semantics=("parallel",),
            vmem_limit_bytes=32 * 1024 * 1024,
        ),
    )(x2d, w1t_pad, w2t_pad)

    # Slice + cast fused by XLA inside this jit (no standalone HBM copy pass).
    return out[:, :OUT].astype(jnp.float32)


def reference_forward(x_nchw, w1, w2):
    B = x_nchw.shape[0]
    x2d = x_nchw.reshape(B, IN_DIM).astype(jnp.float32)
    h = x2d @ w1.T
    h = 1.0 / (1.0 + jnp.exp(-2.0 * h))
    return h @ w2.T


if __name__ == "__main__":
    key = jax.random.PRNGKey(0)
    kx, k1, k2 = jax.random.split(key, 3)

    # Deterministic parameter init matching nn.Linear(784,100)/(100,10), bias=False:
    # uniform(-1/sqrt(fan_in), 1/sqrt(fan_in)).
    w1 = jax.random.uniform(k1, (HIDDEN, IN_DIM), dtype=jnp.float32,
                            minval=-1.0 / (IN_DIM ** 0.5), maxval=1.0 / (IN_DIM ** 0.5))
    w2 = jax.random.uniform(k2, (OUT, HIDDEN), dtype=jnp.float32,
                            minval=-1.0 / (HIDDEN ** 0.5), maxval=1.0 / (HIDDEN ** 0.5))

    # Weight prep done once at "model load" time, not per forward call.
    w1t_pad, w2t_pad = prepare_weights(w1, w2, dtype=jnp.bfloat16)

    # Small primary case (B=2) plus a ragged-batch case (B=13) to exercise the
    # no-padding final-block path.
    for B in (2, 13):
        x = jax.random.normal(kx, (B, 1, 28, 28), dtype=jnp.float32)
        out = mnist_fc_forward(x, w1t_pad, w2t_pad)
        out = jax.block_until_ready(out)

        ref = reference_forward(x, w1, w2)
        assert out.shape == (B, OUT)
        # bf16 matmul inputs / bf16 output store vs f32 reference -> loosened tolerance.
        assert jnp.allclose(out, ref, atol=2e-2, rtol=2e-2), (
            f"B={B}: max abs err {jnp.max(jnp.abs(out - ref))}")

    print("KERNEL_OK")
</pallas_src>

<mosaic_0001>
module attributes {stable_mosaic.version = 11 : i64} {
  func.func @mnist_fc_kernel(%arg0: i32, %arg1: memref<8x784xf32, #tpu.memory_space<vmem>>, %arg2: memref<784x128xbf16, #tpu.memory_space<vmem>>, %arg3: memref<128x128xbf16, #tpu.memory_space<vmem>>, %arg4: memref<8x128xbf16, #tpu.memory_space<vmem>>) attributes {dimension_semantics = [#tpu.dimension_semantics<parallel>], iteration_bounds = array<i64: 1>, scalar_prefetch = 0 : i64, scratch_operands = 0 : i64, tpu.core_type = #tpu.core_type<tc>, window_params = [{transform_indices = @transform_0, window_bounds = array<i64: 8, 784>}, {pipeline_mode = #tpu.pipeline_mode<synchronous>, transform_indices = @transform_1, window_bounds = array<i64: 784, 128>}, {pipeline_mode = #tpu.pipeline_mode<synchronous>, transform_indices = @transform_2, window_bounds = array<i64: 128, 128>}, {transform_indices = @transform_3, window_bounds = array<i64: 8, 128>}]} {
    %c0 = arith.constant 0 : index
    %c0_0 = arith.constant 0 : index
    %0 = vector.load %arg1[%c0, %c0_0] : memref<8x784xf32, #tpu.memory_space<vmem>>, vector<8x784xf32>
    %1 = arith.truncf %0 : vector<8x784xf32> to vector<8x784xbf16>
    %c0_1 = arith.constant 0 : index
    %c0_2 = arith.constant 0 : index
    %2 = vector.load %arg2[%c0_1, %c0_2] : memref<784x128xbf16, #tpu.memory_space<vmem>>, vector<784x128xbf16>
    %cst = arith.constant dense<0.000000e+00> : vector<8x128xf32>
    %3 = tpu.matmul %1, %2, %cst {dimension_numbers = #tpu.dot_dimension_numbers<[1], [0], [0], [1], [0, 0, 1, 1], [], []>} : vector<8x784xbf16>, vector<784x128xbf16>, vector<8x128xf32> -> vector<8x128xf32>
    %4 = math.tanh %3 : vector<8x128xf32>
    %cst_3 = arith.constant 1.000000e+00 : f32
    %5 = vector.broadcast %cst_3 : f32 to vector<8x128xf32>
    %6 = arith.addf %4, %5 : vector<8x128xf32>
    %cst_4 = arith.constant 5.000000e-01 : f32
    %7 = vector.broadcast %cst_4 : f32 to vector<8x128xf32>
    %8 = arith.mulf %7, %6 : vector<8x128xf32>
    %c0_5 = arith.constant 0 : index
    %c0_6 = arith.constant 0 : index
    %9 = vector.load %arg3[%c0_5, %c0_6] : memref<128x128xbf16, #tpu.memory_space<vmem>>, vector<128x128xbf16>
    %10 = arith.extf %9 : vector<128x128xbf16> to vector<128x128xf32>
    %cst_7 = arith.constant dense<0.000000e+00> : vector<8x128xf32>
    %11 = tpu.matmul %8, %10, %cst_7 {dimension_numbers = #tpu.dot_dimension_numbers<[1], [0], [0], [1], [0, 0, 1, 1], [], []>} : vector<8x128xf32>, vector<128x128xf32>, vector<8x128xf32> -> vector<8x128xf32>
    %12 = arith.truncf %11 : vector<8x128xf32> to vector<8x128xbf16>
    %c0_8 = arith.constant 0 : index
    %c0_9 = arith.constant 0 : index
    %13 = vector.load %arg4[%c0_8, %c0_9] : memref<8x128xbf16, #tpu.memory_space<vmem>>, vector<8x128xbf16>
    tpu.vector_store %arg4[%c0_8, %c0_9], %12 {strides = array<i32>} : memref<8x128xbf16, #tpu.memory_space<vmem>>, vector<8x128xbf16>,
    return
  }
  func.func @transform_0(%arg0: i32) -> (i32, i32) {
    %c0_i32 = arith.constant 0 : i32
    %c0_i32_0 = arith.constant 0 : i32
    return %arg0, %c0_i32 : i32, i32
  }
  func.func @transform_1(%arg0: i32) -> (i32, i32) {
    %c0_i32 = arith.constant 0 : i32
    %c0_i32_0 = arith.constant 0 : i32
    %c0_i32_1 = arith.constant 0 : i32
    return %c0_i32, %c0_i32_0 : i32, i32
  }
  func.func @transform_2(%arg0: i32) -> (i32, i32) {
    %c0_i32 = arith.constant 0 : i32
    %c0_i32_0 = arith.constant 0 : i32
    %c0_i32_1 = arith.constant 0 : i32
    return %c0_i32, %c0_i32_0 : i32, i32
  }
  func.func @transform_3(%arg0: i32) -> (i32, i32) {
    %c0_i32 = arith.constant 0 : i32
    %c0_i32_0 = arith.constant 0 : i32
    return %arg0, %c0_i32 : i32, i32
  }
}

</mosaic_0001>

<bundles_post_ra>
// kernel: mnist_fc_forward.1
= control target key start
LH: loop header
LB: loop body
LE: loop exit
PB: predicated region body
PF: predicated region fallthrough
CT: control target
= control target key end

     0   :  { %8 = vsyncpa [#allocation3], 0  ;;  %s1010_s15 = smov [#allocation2]   ;;  %s1011_s17 = smov 64   ;;  %s1087_s0 = inlined_call_operand.vmem [shape: f32[2,784], index: 0, kind: input, shape index: {}]   ;;  %s1088_s1 = inlined_call_operand.hbm [shape: bf16[784,128], index: 1, kind: input, shape index: {}]   ;;  %s1089_s2 = inlined_call_operand.vmem [shape: bf16[128,128], index: 2, kind: input, shape index: {}]   ;;  %s1090_s3 = inlined_call_operand.vmem [shape: bf16[2,128], index: 3, kind: output, shape index: {}]  }
   0x1   :  { %s15_s14 = sshll.u32 %s1088_s1, 4  ;;  %s17_s16 = sshll.u32 %s1010_s15, 4  ;;  %s16_s14 = int_to_ptr.hbm [resolvable:$true] %s15_s14  ;;  %s18_s16 = int_to_ptr.vmem [resolvable:$true] %s17_s16 }
   0x2   :  { %s1012_s18 = smov 4  }
   0x3   :  { %23 = dma.hbm_to_vmem [thread:$0]  %s16_s14, 6272, %s18_s16, [#allocation3], %s1011_s17, %s1011_s17, %s1012_s18  }
   0x4   :  { %1008 = dma.done.wait [#allocation3], 6272  }
   0x5   :  { %1009 = vsyncadd [#allocation3], 4294961024  ;;  %v898_v0 = vld [vmem:[#allocation2 + $0x38] sm:$0xff]  ;;  %v897_v3 = vld [vmem:[#allocation2 + $0x30] sm:$0xff]  ;;  %vm475_vm0 = vcmask 130048   ;;  %vm628_vm1 = vcmask 1040384  }
   0x6   :  { %v906_v1 = vld [vmem:[#allocation2 + $0x78] sm:$0xff]  ;;  %479 = vmatpush.bf16.msra.mxu0 %v898_v0  ;;  %v905_v4 = vld [vmem:[#allocation2 + $0x70] sm:$0xff]  ;;  %v896_v8 = vld [vmem:[#allocation2 + $0x28] sm:$0xff] }
   0x7   :  { %v914_v2 = vld [vmem:[#allocation2 + $0xb8] sm:$0xff]  ;;  %492 = vmatpush.bf16.msra.mxu1 %v906_v1  ;;  %v913_v5 = vld [vmem:[#allocation2 + $0xb0] sm:$0xff]  ;;  %v904_v9 = vld [vmem:[#allocation2 + $0x68] sm:$0xff] }
   0x8   :  { %505 = vmatpush.bf16.msra.mxu2 %v914_v2  ;;  %v922_v6 = vld [vmem:[#allocation2 + $0xf8] sm:$0xff]  ;;  %v921_v7 = vld [vmem:[#allocation2 + $0xf0] sm:$0xff]  ;;  %v912_v10 = vld [vmem:[#allocation2 + $0xa8] sm:$0xff] }
   0x9   :  { %518 = vmatpush.bf16.msra.mxu3 %v922_v6  ;;  %v920_v11 = vld [vmem:[#allocation2 + $0xe8] sm:$0xff]  ;;  %v895_v12 = vld [vmem:[#allocation2 + $0x20] sm:$0xff]  ;;  %v31_v15 = vld [vmem:[%s1087_s0] sm:$0xff] }
   0xa   :  { %480 = vmatpush.bf16.msra.mxu0 %v897_v3  ;;  %v903_v13 = vld [vmem:[#allocation2 + $0x60] sm:$0xff]  ;;  %v35_v17 = vld [vmem:[%s1087_s0 + $0x1c] sm:$0xff]  ;;  %47 = vst [vmem:[#allocation1] ss:$4 sm:$0xff] %v31_v15  ;;  %v34_v24 = vld [vmem:[%s1087_s0 + $0x16] sm:$0x3f] }
   0xb   :  { %493 = vmatpush.bf16.msra.mxu1 %v905_v4  ;;  %v911_v14 = vld [vmem:[#allocation2 + $0xa0] sm:$0xff]  ;;  %v894_v20 = vld [vmem:[#allocation2 + $0x18] sm:$0xff]  ;;  %51 = vst [vmem:[#allocation1 + $0x2] ss:$4 sm:$0xff] %v35_v17  ;;  %v38_v27 = vld [vmem:[%s1087_s0 + $0x32] sm:$0x3f] }
   0xc   :  { %506 = vmatpush.bf16.msra.mxu2 %v913_v5  ;;  %v33_v16 = vld [vmem:[%s1087_s0 + $0xe] sm:$0xff]  ;;  %v902_v21 = vld [vmem:[#allocation2 + $0x58] sm:$0xff]  ;;  %v32_v23 = vld [vmem:[%s1087_s0 + $0x8] sm:$0x3f]  ;;  %57 = vst [vmem:[#allocation1 + $0x21] ss:$4 sm:$0xff] %v34_v24 }
   0xd   :  { %519 = vmatpush.bf16.msra.mxu3 %v921_v7  ;;  %v37_v18 = vld [vmem:[%s1087_s0 + $0x2a] sm:$0xff]  ;;  %49 = vst [vmem:[#allocation1 + $0x1] ss:$4 sm:$0xff] %v33_v16  ;;  %v910_v22 = vld [vmem:[#allocation2 + $0x98] sm:$0xff]  ;;  %v893_v28 = vld [vmem:[#allocation2 + $0x10] sm:$0xff] }
   0xe   :  { %481 = vmatpush.bf16.msra.mxu0 %v896_v8  ;;  %v919_v19 = vld [vmem:[#allocation2 + $0xe0] sm:$0xff]  ;;  %53 = vst [vmem:[#allocation1 + $0x3] ss:$4 sm:$0xff] %v37_v18  ;;  %v918_v26 = vld [vmem:[#allocation2 + $0xd8] sm:$0xff]  ;;  %v901_v29 = vld [vmem:[#allocation2 + $0x50] sm:$0xff] }
   0xf   :  { %494 = vmatpush.bf16.msra.mxu1 %v904_v9  ;;  %v36_v25 = vld [vmem:[%s1087_s0 + $0x24] sm:$0x3f]  ;;  %55 = vst [vmem:[#allocation1 + $0x20] ss:$4 sm:$0xff] %v32_v23  ;;  %v909_v30 = vld [vmem:[#allocation2 + $0x90] sm:$0xff]  ;;  %v892_v32 = vld [vmem:[#allocation2 + $0x8] sm:$0xff] }
  0x10   :  { %507 = vmatpush.bf16.msra.mxu2 %v912_v10  ;;  %59 = vst [vmem:[#allocation1 + $0x22] ss:$4 sm:$0xff] %v36_v25  ;;  %v917_v31 = vld [vmem:[#allocation2 + $0xd0] sm:$0xff]  ;;  %v900_v33 = vld [vmem:[#allocation2 + $0x48] sm:$0xff]  ;;  %v891_v35 = vld [vmem:[#allocation2] sm:$0xff] }
  0x11   :  { %520 = vmatpush.bf16.msra.mxu3 %v920_v11  ;;  %61 = vst [vmem:[#allocation1 + $0x23] ss:$4 sm:$0xff] %v38_v27  ;;  %v908_v34 = vld [vmem:[#allocation2 + $0x88] sm:$0xff]  ;;  %v899_v36 = vld [vmem:[#allocation2 + $0x40] sm:$0xff]  ;;  %v930_v40 = vld [vmem:[#allocation2 + $0x138] sm:$0xff] }
  0x12   :  { %482 = vmatpush.bf16.msra.mxu0 %v895_v12  ;;  %v916_v37 = vld [vmem:[#allocation2 + $0xc8] sm:$0xff]  ;;  %v938_v41 = vld [vmem:[#allocation2 + $0x178] sm:$0xff]  ;;  %v907_v42 = vld [vmem:[#allocation2 + $0x80] sm:$0xff] }
  0x13   :  { %495 = vmatpush.bf16.msra.mxu1 %v903_v13  ;;  %v915_v46 = vld [vmem:[#allocation2 + $0xc0] sm:$0xff]  ;;  %v929_v49 = vld [vmem:[#allocation2 + $0x130] sm:$0xff]  ;;  %v928_v53 = vld [vmem:[#allocation2 + $0x128] sm:$0xff] }
  0x14   :  { %508 = vmatpush.bf16.msra.mxu2 %v911_v14  ;;  %v939_v48 = vld [vmem:[#allocation2 + $0x180] sm:$0xff]  ;;  %v937_v50 = vld [vmem:[#allocation2 + $0x170] sm:$0xff]  ;;  %v936_v54 = vld [vmem:[#allocation2 + $0x168] sm:$0xff] }
  0x15   :  { %521 = vmatpush.bf16.msra.mxu3 %v919_v19  ;;  %v62_v38 = vld.sshfl [vmem:[#allocation1] sm:$0xff pattern:$0x73625140]  ;;  %v63_v39 = vld.sshfl [vmem:[#allocation1 + $0x8] sm:$0xff pattern:$0x73625140] }
  0x16   :  { %483 = vmatpush.bf16.msra.mxu0 %v894_v20  ;;  %v64_v43 = vld.sshfl [vmem:[#allocation1 + $0x10] sm:$0xff pattern:$0x73625140]  ;;  %v76_v44 = vpack.c.bf16 %v62_v38, %v62_v38  ;;  %v77_v45 = vpack.c.bf16 %v63_v39, %v63_v39  ;;  %v65_v47 = vld.sshfl [vmem:[#allocation1 + $0x18] sm:$0xff pattern:$0x73625140] }
  0x17   :  { %496 = vmatpush.bf16.msra.mxu1 %v902_v21  ;;  %v78_v51 = vpack.c.bf16 %v64_v43, %v64_v43  ;;  %v79_v52 = vpack.c.bf16 %v65_v47, %v65_v47  ;;  %v927_v55 = vld [vmem:[#allocation2 + $0x120] sm:$0xff]  ;;  %v926_v57 = vld [vmem:[#allocation2 + $0x118] sm:$0xff]  ;;  %v925_v60 = vld [vmem:[#allocation2 + $0x110] sm:$0xff] }
  0x18   :  { %509 = vmatpush.bf16.msra.mxu2 %v910_v22  ;;  %v935_v56 = vld [vmem:[#allocation2 + $0x160] sm:$0xff]  ;;  %v934_v58 = vld [vmem:[#allocation2 + $0x158] sm:$0xff]  ;;  %v68_v59 = vld.sshfl [vmem:[#allocation1 + $0x30] sm:$0xff pattern:$0x73625140] }
  0x19   :  { %522 = vmatpush.bf16.msra.mxu3 %v918_v26  ;;  %v933_v61 = vld [vmem:[#allocation2 + $0x150] sm:$0xff]  ;;  %v82_v62 = vpack.c.bf16 %v68_v59, %v68_v59  ;;  %v924_v63 = vld [vmem:[#allocation2 + $0x108] sm:$0xff]  ;;  %v923_v1 = vld [vmem:[#allocation2 + $0x100] sm:$0xff] }
  0x1a   :  { %484 = vmatpush.bf16.msra.mxu0 %v893_v28  ;;  %v932_v0 = vld [vmem:[#allocation2 + $0x148] sm:$0xff]  ;;  %v931_v2 = vld [vmem:[#allocation2 + $0x140] sm:$0xff]  ;;  %v66_v3 = vld.sshfl [vmem:[#allocation1 + $0x20] sm:$0xff pattern:$0x73625140] }
  0x1b   :  { %497 = vmatpush.bf16.msra.mxu1 %v901_v29  ;;  %v67_v4 = vld.sshfl [vmem:[#allocation1 + $0x28] sm:$0xff pattern:$0x73625140]  ;;  %v80_v5 = vpack.c.bf16 %v66_v3, %v66_v3  ;;  %v978_v7 = vld [vmem:[%s1089_s2 + $0x38] sm:$0xff]   ;;  %v977_v10 = vld [vmem:[%s1089_s2 + $0x30] sm:$0xff]  }
  0x1c   :  { %510 = vmatpush.bf16.msra.mxu2 %v909_v30  ;;  %v81_v6 = vpack.c.bf16 %v67_v4, %v67_v4  ;;  %v971_v8 = vunpack.c.h.bf16 %v978_v7  ;;  %v970_v9 = vunpack.c.l.bf16 %v978_v7  ;;  %v976_v11 = vld [vmem:[%s1089_s2 + $0x28] sm:$0xff]   ;;  %v967_v12 = vunpack.c.h.bf16 %v977_v10  ;;  %v975_v16 = vld [vmem:[%s1089_s2 + $0x20] sm:$0xff]   ;;  %v974_v19 = vld [vmem:[%s1089_s2 + $0x18] sm:$0xff]  }
  0x1d   :  { %523 = vmatpush.bf16.msra.mxu3 %v917_v31  ;;  %v966_v13 = vunpack.c.l.bf16 %v977_v10  ;;  %v963_v14 = vunpack.c.h.bf16 %v976_v11  ;;  %v962_v15 = vunpack.c.l.bf16 %v976_v11  ;;  %v959_v17 = vunpack.c.h.bf16 %v975_v16  ;;  %v973_v24 = vld [vmem:[%s1089_s2 + $0x10] sm:$0xff]   ;;  %v972_v27 = vld [vmem:[%s1089_s2 + $0x8] sm:$0xff]   ;;  %v941_v28 = vld [vmem:[%s1089_s2] sm:$0xff]  }
  0x1e   :  { %485 = vmatpush.bf16.msra.mxu0 %v892_v32  ;;  %v958_v18 = vunpack.c.l.bf16 %v975_v16  ;;  %v955_v20 = vunpack.c.h.bf16 %v974_v19  ;;  %v954_v23 = vunpack.c.l.bf16 %v974_v19  ;;  %v951_v25 = vunpack.c.h.bf16 %v973_v24 }
  0x1f   :  { %498 = vmatpush.bf16.msra.mxu1 %v900_v33  ;;  %v950_v26 = vunpack.c.l.bf16 %v973_v24  ;;  %v947_v29 = vunpack.c.h.bf16 %v972_v27  ;;  %v946_v30 = vunpack.c.l.bf16 %v972_v27  ;;  %v943_v33 = vunpack.c.h.bf16 %v941_v28 }
  0x20   :  { %511 = vmatpush.bf16.msra.mxu2 %v908_v34 }
  0x21   :  { %524 = vmatpush.bf16.msra.mxu3 %v916_v37 }
  0x22   :  { %486 = vmatpush.bf16.msra.mxu0 %v891_v35 }
  0x23   :  { %499 = vmatpush.bf16.msra.mxu1 %v899_v36  ;;  %v942_v36 = vunpack.c.l.bf16 %v941_v28 }
  0x24   :  { %512 = vmatpush.bf16.msra.mxu2 %v907_v42 }
  0x25   :  { %487 = vmatmul.bf16.vlgmr.msra.gmra.mxu0 %v76_v44  ;;  %525 = vmatpush.bf16.msra.mxu3 %v915_v46 }
  0x26   :  { %531 = vmatpush.bf16.msrb.mxu0 %v930_v40  ;;  %500 = vmatmul.bf16.vlgmr.msra.gmra.mxu1 %v77_v45 }
  0x27   :  { %544 = vmatpush.bf16.msrb.mxu1 %v938_v41  ;;  %513 = vmatmul.bf16.vlgmr.msra.gmra.mxu2 %v78_v51 }
  0x28   :  { %564 = vmatpush.bf16.msrb.mxu2 %v939_v48  ;;  %526 = vmatmul.bf16.vlgmr.msra.gmra.mxu3 %v79_v52 }
  0x29   :  { %605 = vmatpush.msrb.mxu3 %v971_v8 }
  0x2a   :  { %532 = vmatpush.bf16.msrb.mxu0 %v929_v49 }
  0x2b   :  { %545 = vmatpush.bf16.msrb.mxu1 %v937_v50  ;;  %606 = vmatpush.msrb.mxu3 %v970_v9 }
  0x2d   :  { %607 = vmatpush.msrb.mxu3 %v967_v12 }
  0x2e   :  { %533 = vmatpush.bf16.msrb.mxu0 %v928_v53 }
  0x2f   :  { %546 = vmatpush.bf16.msrb.mxu1 %v936_v54  ;;  %608 = vmatpush.msrb.mxu3 %v966_v13 }
  0x31   :  { %609 = vmatpush.msrb.mxu3 %v963_v14 }
  0x32   :  { %534 = vmatpush.bf16.msrb.mxu0 %v927_v55 }
  0x33   :  { %547 = vmatpush.bf16.msrb.mxu1 %v935_v56  ;;  %610 = vmatpush.msrb.mxu3 %v962_v15 }
  0x35   :  { %611 = vmatpush.msrb.mxu3 %v959_v17 }
  0x36   :  { %535 = vmatpush.bf16.msrb.mxu0 %v926_v57 }
  0x37   :  { %548 = vmatpush.bf16.msrb.mxu1 %v934_v58  ;;  %890 = vmatmul.msk.bf16.vlgmr.msrb.gmra.mxu2 %vm475_vm0, %v82_v62 }
  0x38   :  { %612 = vmatpush.msrb.mxu3 %v958_v18 }
  0x3a   :  { %536 = vmatpush.bf16.msrb.mxu0 %v925_v60  ;;  %613 = vmatpush.msrb.mxu3 %v955_v20 }
  0x3b   :  { %549 = vmatpush.bf16.msrb.mxu1 %v933_v61 }
  0x3c   :  { %614 = vmatpush.msrb.mxu3 %v954_v23 }
  0x3e   :  { %537 = vmatpush.bf16.msrb.mxu0 %v924_v63  ;;  %615 = vmatpush.msrb.mxu3 %v951_v25 }
  0x3f   :  { %550 = vmatpush.bf16.msrb.mxu1 %v932_v0 }
  0x40   :  { %616 = vmatpush.msrb.mxu3 %v950_v26 }
  0x42   :  { %538 = vmatpush.bf16.msrb.mxu0 %v923_v1  ;;  %617 = vmatpush.msrb.mxu3 %v947_v29 }
  0x43   :  { %551 = vmatpush.bf16.msrb.mxu1 %v931_v2 }
  0x44   :  { %618 = vmatpush.msrb.mxu3 %v946_v30 }
  0x45   :  { %539 = vmatmul.bf16.vlgmr.msrb.gmra.mxu0 %v80_v5 }
  0x46   :  { %552 = vmatmul.bf16.vlgmr.msrb.gmra.mxu1 %v81_v6  ;;  %619 = vmatpush.msrb.mxu3 %v943_v33 }
  0x48   :  { %620 = vmatpush.msrb.mxu3 %v942_v36 }
  0xa2   :  { %v488_v21 = vpop.f32.mrf.mxu0 }
  0xa3   :  { %v501_v22 = vpop.f32.mrf.mxu1 }
  0xa4   :  { %v502_v39 = vadd.f32 %v501_v22, %v488_v21 }
  0xaa   :  { %v490_v31 = vpop.f32.mrf.mxu0  ;;  %v514_v34 = vpop.f32.mrf.mxu2 }
  0xab   :  { %v503_v32 = vpop.f32.mrf.mxu1  ;;  %v527_v35 = vpop.f32.mrf.mxu3  ;;  %v515_v40 = vadd.f32 %v514_v34, %v502_v39 }
  0xad   :  { %v528_v42 = vadd.f32 %v527_v35, %v515_v40 }
  0xb2   :  { %v516_v37 = vpop.f32.mrf.mxu2 }
  0xb3   :  { %v529_v38 = vpop.f32.mrf.mxu3 }
  0xba   :  { %v566_v41 = vpop.f32.mrf.mxu2 }
  0xc2   :  { %v540_v43 = vpop.f32.mrf.mxu0  ;;  %v568_v47 = vpop.f32.mrf.mxu2 }
  0xc3   :  { %v553_v44 = vpop.f32.mrf.mxu1  ;;  %v541_v45 = vadd.f32 %v540_v43, %v528_v42 }
  0xc5   :  { %v554_v46 = vadd.f32 %v553_v44, %v541_v45 }
  0xc7   :  { %v567_v48 = vadd.f32 %v566_v41, %v554_v46 }
  0xc9   :  { %982 = vtanh.f32 %v567_v48 }
  0xca   :  { %v542_v49 = vpop.f32.mrf.mxu0 }
  0xcb   :  { %v555_v50 = vpop.f32.mrf.mxu1 }
  0xcf   :  { %v983_v51 = vpop.eup %982 }
  0xd0   :  { %v571_v52 = vadd.f32 1.0, %v983_v51 }
  0xd2   :  { %v572_v53 = vmul.f32 0.5, %v571_v52 }
  0xd4   :  { %621 = vmatmul.f32.vlgmr.msrb.gmra.mxu3 %v572_v53 }
 0x157   :  { %v622_v54 = vpop.f32.mrf.mxu3 }
 0x158   :  { %v625_v55 = vpack.c.bf16 %v622_v54, %v622_v54 }
 0x15a   :  { %v627_v56 = vrot.slane %v625_v55, 3 }
 0x15c   :  { %v631_v57 = vsel %vm628_vm1, %v625_v55, %v627_v56 }
 0x15d   :  { %648 = vst [vmem:[#allocation4] sm:$0x1] %v631_v57 }
 0x164   :  { %v670_v58 = vld [vmem:[#allocation4] sm:$0x1] }
 0x165   :  { %671 = vst [vmem:[%s1090_s3] sm:$0x1] %v670_v58 }
 0x166   :  { %689 = vsyncpa [#allocation3], 1 }

</bundles_post_ra>
